<compile_context>
chip_gen: v7x
topology: tpu7x:2x2x1
jax: 0.10.0
libtpu: 0.0.40
codegen_flags: <defaults>
</compile_context>

<pallas_src>
import numpy as np
import jax
import jax.numpy as jnp
from jax import lax
from jax.experimental import pallas as pl
from jax.experimental.pallas import tpu as pltpu


# --------------------------------------------------------------------------
# _gather_last_out: out[b, :] = rnn_outs[b, lens[b] - 1, :]
#
# Single grid step.  lens sits in SMEM (scalar prefetch) and drives B
# data-dependent HBM->HBM async copies of one (1, D) row each; copies are all
# issued first, then all waited on, so the per-step pipeline / masked-store
# overhead of the previous one-row-per-step version is gone entirely.
# --------------------------------------------------------------------------
def _gather_last_kernel(lens_ref, rnn_hbm, out_hbm, sems):
    B = out_hbm.shape[0]
    # Issue every row copy before waiting on any of them (max DMA overlap).
    for b in range(B):
        t = jnp.maximum(lens_ref[b] - 1, 0)  # clamp: lens==0 would be OOB (no HW bounds check)
        pltpu.make_async_copy(rnn_hbm.at[b, pl.ds(t, 1), :],
                              out_hbm.at[pl.ds(b, 1), :],
                              sems.at[b]).start()
    for b in range(B):
        # Wait descriptor only needs matching shapes/bytes for this sem.
        pltpu.make_async_copy(rnn_hbm.at[b, pl.ds(0, 1), :],
                              out_hbm.at[pl.ds(b, 1), :],
                              sems.at[b]).wait()


def pallas_gather_last(rnn_outs, lens):
    B, T, D = rnn_outs.shape
    return pl.pallas_call(
        _gather_last_kernel,
        out_shape=jax.ShapeDtypeStruct((B, D), rnn_outs.dtype),
        grid_spec=pltpu.PrefetchScalarGridSpec(
            num_scalar_prefetch=1,
            grid=(1,),
            in_specs=[pl.BlockSpec(memory_space=pl.ANY)],   # raw HBM ref, no auto-DMA
            out_specs=pl.BlockSpec(memory_space=pl.ANY),    # DMA'd into directly
            scratch_shapes=[pltpu.SemaphoreType.DMA((B,))],
        ),
        compiler_params=pltpu.CompilerParams(
            dimension_semantics=("arbitrary",)),
    )(lens.astype(jnp.int32), rnn_outs)


# --------------------------------------------------------------------------
# _remove_padding: per row, compact the rows of `feats`/`words` whose word id
# is non-zero to the front; remaining slots are zero.
#
# Batched formulation (GB rows per grid step):
#   valid    = words != 0                                  (GB, T)
#   prefix   = valid_f @ incl   (incl = constant upper-tri, VMEM-resident)
#   onehot   = (dst_iota == pos) & valid                   (GB, T, T)
#   feats    = einsum('gds,gsf->gdf', onehot, feats)       (MXU, f32 acc)
#   words    = sum(where(onehot, words, 0), axis=src)      (exact int32 path)
#   counts   = prefix[:, -1]                               (for the trim path)
# No serial scalar-gated dynamic stores, no per-step regeneration of the
# (T, T) constants, no per-element SMEM writes.
# --------------------------------------------------------------------------
def _remove_padding_kernel(incl_ref, dst_ref, words_ref, feats_ref,
                           out_feats_ref, out_words_ref, counts_ref):
    GB, T = words_ref.shape
    w = words_ref[...]                                   # (GB, T) int32
    valid = w != 0                                       # (GB, T) bool

    # prefix[g, s] = #valid tokens at positions <= s (tiny MXU matmul against
    # the constant, resident upper-triangular matrix; avoids lax.cumsum).
    prefix = jnp.dot(valid.astype(jnp.float32), incl_ref[...],
                     preferred_element_type=jnp.float32)  # (GB, T)
    pos = prefix.astype(jnp.int32) - 1                    # destination slot per src

    # one-hot permutation in [g, dst, src] layout (dst iota is a constant input).
    onehot = jnp.logical_and(dst_ref[...][None, :, :] == pos[:, None, :],
                             valid[:, None, :])          # (GB, T, T) bool
    onehot_f = onehot.astype(feats_ref.dtype)

    # Compact feature rows on the MXU (batched): (GB,T,T) @ (GB,T,F) -> (GB,T,F).
    res = jnp.einsum('gds,gsf->gdf', onehot_f, feats_ref[...],
                     preferred_element_type=jnp.float32)
    out_feats_ref[...] = res.astype(out_feats_ref.dtype)

    # Exact integer compaction of word ids on the VPU/XLU (no f32 round-trip,
    # no 2^24 vocab-id cap).
    out_words_ref[...] = jnp.sum(
        jnp.where(onehot, w[:, None, :], 0), axis=2).astype(jnp.int32)

    # Per-row valid count, consumed by the trim path (saves a second full
    # read of `words` plus an extra XLA launch before the host sync).
    counts_ref[...] = prefix[:, T - 1:T].astype(jnp.int32)


def pallas_remove_padding(feats, words):
    B, T, F = feats.shape
    words = words.astype(jnp.int32)
    itemsize = jnp.dtype(feats.dtype).itemsize

    # Rows per grid step: 8 (sublane-aligned word/count blocks, amortized
    # per-step overhead) unless double-buffered feats in+out would blow the
    # ~32 MiB default scoped VMEM (v7x has only 64 MiB physical).
    budget = 24 * 2**20
    per_row = 4 * T * F * itemsize + 8 * T * 4   # 2 bufs x (in+out) feats + words
    GB = int(max(1, min(8, budget // max(per_row, 1))))
    B_pad = ((B + GB - 1) // GB) * GB
    if B_pad != B:
        feats = jnp.pad(feats, ((0, B_pad - B), (0, 0), (0, 0)))
        words = jnp.pad(words, ((0, B_pad - B), (0, 0)))

    # Loop-invariant (T, T) helpers: built once on host, kept VMEM-resident via
    # a constant index_map (never rebuilt per step; safe under "parallel").
    incl = jnp.asarray(
        (np.arange(T)[:, None] <= np.arange(T)[None, :]).astype(np.float32))
    dst = jnp.asarray(np.ascontiguousarray(
        np.broadcast_to(np.arange(T, dtype=np.int32)[:, None], (T, T))))

    est = (2 * (2 * GB * T * F * itemsize + 4 * GB * T + 4 * GB)  # dbl-buffered I/O
           + 2 * T * T * 4                                        # resident constants
           + GB * T * T * 8)                                      # onehot intermediates
    vmem_limit = int(min(64 * 2**20, max(32 * 2**20, 2 * est)))

    out_feats, out_words, counts = pl.pallas_call(
        _remove_padding_kernel,
        out_shape=(jax.ShapeDtypeStruct((B_pad, T, F), feats.dtype),
                   jax.ShapeDtypeStruct((B_pad, T), jnp.int32),
                   jax.ShapeDtypeStruct((B_pad, 1), jnp.int32)),
        grid=(B_pad // GB,),
        in_specs=[pl.BlockSpec((T, T), lambda g: (0, 0)),        # incl (constant)
                  pl.BlockSpec((T, T), lambda g: (0, 0)),        # dst  (constant)
                  pl.BlockSpec((GB, T), lambda g: (g, 0)),       # words
                  pl.BlockSpec((GB, T, F), lambda g: (g, 0, 0))],
        out_specs=(pl.BlockSpec((GB, T, F), lambda g: (g, 0, 0)),
                   pl.BlockSpec((GB, T), lambda g: (g, 0)),
                   pl.BlockSpec((GB, 1), lambda g: (g, 0))),
        compiler_params=pltpu.CompilerParams(
            dimension_semantics=("parallel",),
            vmem_limit_bytes=vmem_limit),
    )(incl, dst, words, feats)
    return out_feats[:B], out_words[:B], counts[:B, 0]


# --------------------------------------------------------------------------
# The BaseModel port
# --------------------------------------------------------------------------
class BaseModel:
    """JAX/Pallas port of dgmvae BaseModel's tensor-compute methods."""

    def __init__(self, config=None):
        self.config = config
        self.flush_valid = False
        self.kl_w = 0.0

    def forward(self, *inputs):
        raise NotImplementedError  # same as the PyTorch base class

    def valid_loss(self, loss, batch_cnt=None, step=None):
        # Scalar sum of a handful of losses: kept as plain jnp — a Pallas
        # kernel here is pure launch/DMA overhead.
        total_loss = jnp.float32(0.0)
        for _, l in loss.items():
            if l is not None:
                total_loss = total_loss + jnp.asarray(l, jnp.float32)
        return total_loss

    def model_sel_loss(self, loss, batch_cnt):
        return self.valid_loss(loss, batch_cnt)

    def _gather_last_out(self, rnn_outs, lens):
        lens = jnp.asarray(np.asarray(lens), jnp.int32)
        return pallas_gather_last(jnp.asarray(rnn_outs), lens)

    def _remove_padding(self, feats, words, trim=True):
        if feats is None:
            return None, None
        words = jnp.asarray(words)
        out_feats, out_words, counts = pallas_remove_padding(
            jnp.asarray(feats), words)
        if trim:
            # Mirrors torch.max(batch_lens): one host sync over the (B,) count
            # vector already produced by the kernel (no extra read of `words`).
            # Pass trim=False under jit and slice downstream instead.
            max_word_num = int(jnp.max(counts))
            return out_feats[:, :max_word_num], out_words[:, :max_word_num]
        return out_feats, out_words

    # TODO(synk): np2var / torch2var / backward / get_optimizer are torch
    # Variable / autograd / optimizer plumbing with no Pallas equivalent.


if __name__ == "__main__":
    key = jax.random.PRNGKey(0)
    B, T, D, F = 4, 8, 128, 128   # lane-dense (128) feature dims
    k1, k2 = jax.random.split(key)
    rnn_outs = jax.random.normal(k1, (B, T, D), dtype=jnp.float32)
    feats = jax.random.normal(k2, (B, T, F), dtype=jnp.float32)
    lens = [5, 8, 1, 3]
    words = jnp.array([[3, 5, 0, 7, 0, 2, 0, 0],
                       [1, 2, 3, 4, 5, 6, 7, 8],
                       [9, 0, 0, 0, 0, 0, 0, 0],
                       [0, 4, 0, 11, 0, 0, 2, 0]], dtype=jnp.int32)
    loss = {"nll": jnp.float32(1.25), "kl": jnp.float32(0.5),
            "aux": None, "reg": jnp.float32(0.125)}

    model = BaseModel()

    total = jax.block_until_ready(model.valid_loss(loss))
    last = jax.block_until_ready(model._gather_last_out(rnn_outs, lens))
    f_out, w_out = model._remove_padding(feats, words)
    f_out = jax.block_until_ready(f_out)
    w_out = jax.block_until_ready(w_out)

    # ---- reference checks (pure numpy) ----
    assert abs(float(total) - (1.25 + 0.5 + 0.125)) < 1e-6

    np_rnn = np.asarray(rnn_outs)
    ref_last = np_rnn[np.arange(B), np.array(lens) - 1, :]
    assert np.allclose(np.asarray(last), ref_last, atol=1e-6)

    np_words = np.asarray(words)
    np_feats = np.asarray(feats)
    max_wn = int(np.sign(np_words).sum(axis=1).max())
    ref_w = np.zeros((B, max_wn), np.int32)
    ref_f = np.zeros((B, max_wn, F), np.float32)
    for b in range(B):
        idx = np.nonzero(np_words[b])[0]
        ref_w[b, :len(idx)] = np_words[b, idx]
        ref_f[b, :len(idx)] = np_feats[b, idx]
    assert w_out.shape == (B, max_wn) and f_out.shape == (B, max_wn, F)
    assert np.array_equal(np.asarray(w_out), ref_w)
    assert np.allclose(np.asarray(f_out), ref_f, atol=1e-5)

    print("KERNEL_OK")
</pallas_src>

<mosaic_0001>
module attributes {stable_mosaic.version = 11 : i64} {
  func.func @_gather_last_kernel(%arg0: i32, %arg1: memref<4xi32, #tpu.memory_space<smem>>, %arg2: memref<4x8x128xf32, #tpu.memory_space<any>>, %arg3: memref<4x128xf32, #tpu.memory_space<any>>, %arg4: memref<4x!tpu.dma_semaphore, #tpu.memory_space<semaphore_mem>>) attributes {dimension_semantics = [#tpu.dimension_semantics<arbitrary>], iteration_bounds = array<i64: 1>, scalar_prefetch = 1 : i64, scratch_operands = 1 : i64, tpu.core_type = #tpu.core_type<tc>, window_params = [{}, {}]} {
    %c0 = arith.constant 0 : index
    %0 = memref.load %arg1[%c0] : memref<4xi32, #tpu.memory_space<smem>>
    %c1_i32 = arith.constant 1 : i32
    %1 = arith.subi %0, %c1_i32 : i32
    %c0_i32 = arith.constant 0 : i32
    %2 = arith.maxsi %1, %c0_i32 : i32
    %c0_i32_0 = arith.constant 0 : i32
    %c0_i32_1 = arith.constant 0 : i32
    %c0_i32_2 = arith.constant 0 : i32
    %3 = tpu.memref_slice %arg2[%c0_i32_0, %2, %c0_i32_2] : memref<4x8x128xf32, #tpu.memory_space<any>> -> memref<1x1x128xf32, #tpu.memory_space<any>>
    %4 = tpu.memref_squeeze %3 : memref<1x1x128xf32, #tpu.memory_space<any>> -> memref<1x128xf32, #tpu.memory_space<any>>
    %c0_i32_3 = arith.constant 0 : i32
    %c0_i32_4 = arith.constant 0 : i32
    %5 = tpu.memref_slice %arg3[%c0_i32_3, %c0_i32_4] : memref<4x128xf32, #tpu.memory_space<any>> -> memref<1x128xf32, #tpu.memory_space<any>>
    %6 = tpu.memref_slice %arg4[%c0_i32_1] : memref<4x!tpu.dma_semaphore, #tpu.memory_space<semaphore_mem>> -> memref<1x!tpu.dma_semaphore, #tpu.memory_space<semaphore_mem>>
    %7 = tpu.memref_squeeze %6 : memref<1x!tpu.dma_semaphore, #tpu.memory_space<semaphore_mem>> -> memref<!tpu.dma_semaphore, #tpu.memory_space<semaphore_mem>>
    tpu.enqueue_dma source(%4 : memref<1x128xf32, #tpu.memory_space<any>>) target(%5 : memref<1x128xf32, #tpu.memory_space<any>>) target_semaphore(%7 : memref<!tpu.dma_semaphore, #tpu.memory_space<semaphore_mem>>)
    %c1 = arith.constant 1 : index
    %8 = memref.load %arg1[%c1] : memref<4xi32, #tpu.memory_space<smem>>
    %c1_i32_5 = arith.constant 1 : i32
    %9 = arith.subi %8, %c1_i32_5 : i32
    %c0_i32_6 = arith.constant 0 : i32
    %10 = arith.maxsi %9, %c0_i32_6 : i32
    %c1_i32_7 = arith.constant 1 : i32
    %c1_i32_8 = arith.constant 1 : i32
    %c0_i32_9 = arith.constant 0 : i32
    %11 = tpu.memref_slice %arg2[%c1_i32_7, %10, %c0_i32_9] : memref<4x8x128xf32, #tpu.memory_space<any>> -> memref<1x1x128xf32, #tpu.memory_space<any>>
    %12 = tpu.memref_squeeze %11 : memref<1x1x128xf32, #tpu.memory_space<any>> -> memref<1x128xf32, #tpu.memory_space<any>>
    %c1_i32_10 = arith.constant 1 : i32
    %c0_i32_11 = arith.constant 0 : i32
    %13 = tpu.memref_slice %arg3[%c1_i32_10, %c0_i32_11] : memref<4x128xf32, #tpu.memory_space<any>> -> memref<1x128xf32, #tpu.memory_space<any>>
    %14 = tpu.memref_slice %arg4[%c1_i32_8] : memref<4x!tpu.dma_semaphore, #tpu.memory_space<semaphore_mem>> -> memref<1x!tpu.dma_semaphore, #tpu.memory_space<semaphore_mem>>
    %15 = tpu.memref_squeeze %14 : memref<1x!tpu.dma_semaphore, #tpu.memory_space<semaphore_mem>> -> memref<!tpu.dma_semaphore, #tpu.memory_space<semaphore_mem>>
    tpu.enqueue_dma source(%12 : memref<1x128xf32, #tpu.memory_space<any>>) target(%13 : memref<1x128xf32, #tpu.memory_space<any>>) target_semaphore(%15 : memref<!tpu.dma_semaphore, #tpu.memory_space<semaphore_mem>>)
    %c2 = arith.constant 2 : index
    %16 = memref.load %arg1[%c2] : memref<4xi32, #tpu.memory_space<smem>>
    %c1_i32_12 = arith.constant 1 : i32
    %17 = arith.subi %16, %c1_i32_12 : i32
    %c0_i32_13 = arith.constant 0 : i32
    %18 = arith.maxsi %17, %c0_i32_13 : i32
    %c2_i32 = arith.constant 2 : i32
    %c2_i32_14 = arith.constant 2 : i32
    %c0_i32_15 = arith.constant 0 : i32
    %19 = tpu.memref_slice %arg2[%c2_i32, %18, %c0_i32_15] : memref<4x8x128xf32, #tpu.memory_space<any>> -> memref<1x1x128xf32, #tpu.memory_space<any>>
    %20 = tpu.memref_squeeze %19 : memref<1x1x128xf32, #tpu.memory_space<any>> -> memref<1x128xf32, #tpu.memory_space<any>>
    %c2_i32_16 = arith.constant 2 : i32
    %c0_i32_17 = arith.constant 0 : i32
    %21 = tpu.memref_slice %arg3[%c2_i32_16, %c0_i32_17] : memref<4x128xf32, #tpu.memory_space<any>> -> memref<1x128xf32, #tpu.memory_space<any>>
    %22 = tpu.memref_slice %arg4[%c2_i32_14] : memref<4x!tpu.dma_semaphore, #tpu.memory_space<semaphore_mem>> -> memref<1x!tpu.dma_semaphore, #tpu.memory_space<semaphore_mem>>
    %23 = tpu.memref_squeeze %22 : memref<1x!tpu.dma_semaphore, #tpu.memory_space<semaphore_mem>> -> memref<!tpu.dma_semaphore, #tpu.memory_space<semaphore_mem>>
    tpu.enqueue_dma source(%20 : memref<1x128xf32, #tpu.memory_space<any>>) target(%21 : memref<1x128xf32, #tpu.memory_space<any>>) target_semaphore(%23 : memref<!tpu.dma_semaphore, #tpu.memory_space<semaphore_mem>>)
    %c3 = arith.constant 3 : index
    %24 = memref.load %arg1[%c3] : memref<4xi32, #tpu.memory_space<smem>>
    %c1_i32_18 = arith.constant 1 : i32
    %25 = arith.subi %24, %c1_i32_18 : i32
    %c0_i32_19 = arith.constant 0 : i32
    %26 = arith.maxsi %25, %c0_i32_19 : i32
    %c3_i32 = arith.constant 3 : i32
    %c3_i32_20 = arith.constant 3 : i32
    %c0_i32_21 = arith.constant 0 : i32
    %27 = tpu.memref_slice %arg2[%c3_i32, %26, %c0_i32_21] : memref<4x8x128xf32, #tpu.memory_space<any>> -> memref<1x1x128xf32, #tpu.memory_space<any>>
    %28 = tpu.memref_squeeze %27 : memref<1x1x128xf32, #tpu.memory_space<any>> -> memref<1x128xf32, #tpu.memory_space<any>>
    %c3_i32_22 = arith.constant 3 : i32
    %c0_i32_23 = arith.constant 0 : i32
    %29 = tpu.memref_slice %arg3[%c3_i32_22, %c0_i32_23] : memref<4x128xf32, #tpu.memory_space<any>> -> memref<1x128xf32, #tpu.memory_space<any>>
    %30 = tpu.memref_slice %arg4[%c3_i32_20] : memref<4x!tpu.dma_semaphore, #tpu.memory_space<semaphore_mem>> -> memref<1x!tpu.dma_semaphore, #tpu.memory_space<semaphore_mem>>
    %31 = tpu.memref_squeeze %30 : memref<1x!tpu.dma_semaphore, #tpu.memory_space<semaphore_mem>> -> memref<!tpu.dma_semaphore, #tpu.memory_space<semaphore_mem>>
    tpu.enqueue_dma source(%28 : memref<1x128xf32, #tpu.memory_space<any>>) target(%29 : memref<1x128xf32, #tpu.memory_space<any>>) target_semaphore(%31 : memref<!tpu.dma_semaphore, #tpu.memory_space<semaphore_mem>>)
    %c0_i32_24 = arith.constant 0 : i32
    %c0_i32_25 = arith.constant 0 : i32
    %c0_i32_26 = arith.constant 0 : i32
    %c0_i32_27 = arith.constant 0 : i32
    %32 = tpu.memref_slice %arg2[%c0_i32_24, %c0_i32_26, %c0_i32_27] : memref<4x8x128xf32, #tpu.memory_space<any>> -> memref<1x1x128xf32, #tpu.memory_space<any>>
    %33 = tpu.memref_squeeze %32 : memref<1x1x128xf32, #tpu.memory_space<any>> -> memref<1x128xf32, #tpu.memory_space<any>>
    %c0_i32_28 = arith.constant 0 : i32
    %c0_i32_29 = arith.constant 0 : i32
    %34 = tpu.memref_slice %arg3[%c0_i32_28, %c0_i32_29] : memref<4x128xf32, #tpu.memory_space<any>> -> memref<1x128xf32, #tpu.memory_space<any>>
    %35 = tpu.memref_slice %arg4[%c0_i32_25] : memref<4x!tpu.dma_semaphore, #tpu.memory_space<semaphore_mem>> -> memref<1x!tpu.dma_semaphore, #tpu.memory_space<semaphore_mem>>
    %36 = tpu.memref_squeeze %35 : memref<1x!tpu.dma_semaphore, #tpu.memory_space<semaphore_mem>> -> memref<!tpu.dma_semaphore, #tpu.memory_space<semaphore_mem>>
    tpu.wait_dma2 semaphore(%36 : memref<!tpu.dma_semaphore, #tpu.memory_space<semaphore_mem>>) src(%33 : memref<1x128xf32, #tpu.memory_space<any>>) dst(%34 : memref<1x128xf32, #tpu.memory_space<any>>)
    %c1_i32_30 = arith.constant 1 : i32
    %c1_i32_31 = arith.constant 1 : i32
    %c0_i32_32 = arith.constant 0 : i32
    %c0_i32_33 = arith.constant 0 : i32
    %37 = tpu.memref_slice %arg2[%c1_i32_30, %c0_i32_32, %c0_i32_33] : memref<4x8x128xf32, #tpu.memory_space<any>> -> memref<1x1x128xf32, #tpu.memory_space<any>>
    %38 = tpu.memref_squeeze %37 : memref<1x1x128xf32, #tpu.memory_space<any>> -> memref<1x128xf32, #tpu.memory_space<any>>
    %c1_i32_34 = arith.constant 1 : i32
    %c0_i32_35 = arith.constant 0 : i32
    %39 = tpu.memref_slice %arg3[%c1_i32_34, %c0_i32_35] : memref<4x128xf32, #tpu.memory_space<any>> -> memref<1x128xf32, #tpu.memory_space<any>>
    %40 = tpu.memref_slice %arg4[%c1_i32_31] : memref<4x!tpu.dma_semaphore, #tpu.memory_space<semaphore_mem>> -> memref<1x!tpu.dma_semaphore, #tpu.memory_space<semaphore_mem>>
    %41 = tpu.memref_squeeze %40 : memref<1x!tpu.dma_semaphore, #tpu.memory_space<semaphore_mem>> -> memref<!tpu.dma_semaphore, #tpu.memory_space<semaphore_mem>>
    tpu.wait_dma2 semaphore(%41 : memref<!tpu.dma_semaphore, #tpu.memory_space<semaphore_mem>>) src(%38 : memref<1x128xf32, #tpu.memory_space<any>>) dst(%39 : memref<1x128xf32, #tpu.memory_space<any>>)
    %c2_i32_36 = arith.constant 2 : i32
    %c2_i32_37 = arith.constant 2 : i32
    %c0_i32_38 = arith.constant 0 : i32
    %c0_i32_39 = arith.constant 0 : i32
    %42 = tpu.memref_slice %arg2[%c2_i32_36, %c0_i32_38, %c0_i32_39] : memref<4x8x128xf32, #tpu.memory_space<any>> -> memref<1x1x128xf32, #tpu.memory_space<any>>
    %43 = tpu.memref_squeeze %42 : memref<1x1x128xf32, #tpu.memory_space<any>> -> memref<1x128xf32, #tpu.memory_space<any>>
    %c2_i32_40 = arith.constant 2 : i32
    %c0_i32_41 = arith.constant 0 : i32
    %44 = tpu.memref_slice %arg3[%c2_i32_40, %c0_i32_41] : memref<4x128xf32, #tpu.memory_space<any>> -> memref<1x128xf32, #tpu.memory_space<any>>
    %45 = tpu.memref_slice %arg4[%c2_i32_37] : memref<4x!tpu.dma_semaphore, #tpu.memory_space<semaphore_mem>> -> memref<1x!tpu.dma_semaphore, #tpu.memory_space<semaphore_mem>>
    %46 = tpu.memref_squeeze %45 : memref<1x!tpu.dma_semaphore, #tpu.memory_space<semaphore_mem>> -> memref<!tpu.dma_semaphore, #tpu.memory_space<semaphore_mem>>
    tpu.wait_dma2 semaphore(%46 : memref<!tpu.dma_semaphore, #tpu.memory_space<semaphore_mem>>) src(%43 : memref<1x128xf32, #tpu.memory_space<any>>) dst(%44 : memref<1x128xf32, #tpu.memory_space<any>>)
    %c3_i32_42 = arith.constant 3 : i32
    %c3_i32_43 = arith.constant 3 : i32
    %c0_i32_44 = arith.constant 0 : i32
    %c0_i32_45 = arith.constant 0 : i32
    %47 = tpu.memref_slice %arg2[%c3_i32_42, %c0_i32_44, %c0_i32_45] : memref<4x8x128xf32, #tpu.memory_space<any>> -> memref<1x1x128xf32, #tpu.memory_space<any>>
    %48 = tpu.memref_squeeze %47 : memref<1x1x128xf32, #tpu.memory_space<any>> -> memref<1x128xf32, #tpu.memory_space<any>>
    %c3_i32_46 = arith.constant 3 : i32
    %c0_i32_47 = arith.constant 0 : i32
    %49 = tpu.memref_slice %arg3[%c3_i32_46, %c0_i32_47] : memref<4x128xf32, #tpu.memory_space<any>> -> memref<1x128xf32, #tpu.memory_space<any>>
    %50 = tpu.memref_slice %arg4[%c3_i32_43] : memref<4x!tpu.dma_semaphore, #tpu.memory_space<semaphore_mem>> -> memref<1x!tpu.dma_semaphore, #tpu.memory_space<semaphore_mem>>
    %51 = tpu.memref_squeeze %50 : memref<1x!tpu.dma_semaphore, #tpu.memory_space<semaphore_mem>> -> memref<!tpu.dma_semaphore, #tpu.memory_space<semaphore_mem>>
    tpu.wait_dma2 semaphore(%51 : memref<!tpu.dma_semaphore, #tpu.memory_space<semaphore_mem>>) src(%48 : memref<1x128xf32, #tpu.memory_space<any>>) dst(%49 : memref<1x128xf32, #tpu.memory_space<any>>)
    return
  }
}

</mosaic_0001>

<bundles_post_ra>
// kernel: tpu_custom_call.1
= control target key start
LH: loop header
LB: loop body
LE: loop exit
PB: predicated region body
PF: predicated region fallthrough
CT: control target
= control target key end

     0   :  { %s253_s0 = inlined_call_operand.hbm [shape: s32[4], index: 0, kind: input, shape index: {}]   ;;  %s254_s1 = inlined_call_operand.hbm [shape: f32[4,8,128], index: 1, kind: input, shape index: {}]   ;;  %s255_s2 = inlined_call_operand.hbm [shape: f32[4,128], index: 2, kind: output, shape index: {}]  }
   0x1   :  { %s168_s11 = scalar_lea.hbm %s253_s0, 16 }
   0x2   :  { %p169_p0 = scmp.ne.s32.totalorder %s253_s0, %s168_s11  ;;  %p172_p1 = scmp.lt.u32.totalorder %s168_s11, %s253_s0 }
   0x4   :  { %p174_p2 = pnand %p172_p1, %p169_p0 }
   0x6   :  { %177 = shalt.err (!%p174_p2)  }
   0x7   :  { %s188_s16 = smov [#allocation4]  }
   0x8   :  { %8 = dma.hbm_to_smem %s253_s0, 16, %s188_s16, [#allocation3] }
   0x9   :  { %178 = dma.done.wait [#allocation3], 16 }
   0xa   :  { %179 = vsyncadd [#allocation3], 4294967280 }
   0xb   :  { %10 = sfence }
   0xc   :  { %s11_s19 = sld [smem:[#allocation4]]  ;;  %s189_s25 = smov [#allocation2]  }
   0xd   :  { %s190_s26 = smov [#allocation5]   ;;  %s191_s27 = smov 0  }
   0xe   :  { %s37_s5 = scalar_lea.hbm %s255_s2, 16  ;;  %s192_s11 = smov [#allocation2 + $0x1]  }
   0xf   :  { %s193_s12 = smov [#allocation7]   ;;  %s59_s17 = scalar_lea.hbm %s255_s2, 32 }
  0x10   :  { %s194_s23 = smov [#allocation2 + $0x2]   ;;  %s196_s7 = smov [#allocation2 + $0x3]  }
  0x11   :  { %s197_s8 = smov [#allocation11]  }
  0x12   :  { %s143_s20 = sadd.s32 4294967295, %s11_s19 }
  0x13   :  { %p13_p3 = scmp.gt.s32.totalorder %s143_s20, 0 }
  0x15   :  { %s257_s20 = smov (!%p13_p3, %s143_s20), 0 }
  0x16   :  { %s144_s21 = sshll.u32 %s257_s20, 4 }
  0x17   :  { %s16_s24 = scalar_lea.hbm %s254_s1, %s144_s21 }
  0x18   :  { %29 = dma.general %s16_s24, 16, %s255_s2, %s189_s25, %s190_s26, [#allocation6], %s191_s27, 0  }
  0x19   :  { %s145_s0 = sld [smem:[#allocation4 + $0x1]]  ;;  %s195_s24 = smov [#allocation9]  }
  0x1f   :  { %s146_s30 = sadd.s32 4294967295, %s145_s0  ;;  %s81_s0 = scalar_lea.hbm %s255_s2, 48 }
  0x20   :  { %p32_p4 = scmp.gt.s32.totalorder %s146_s30, 0 }
  0x22   :  { %s259_s30 = smov (!%p32_p4, %s146_s30), 0 }
  0x23   :  { %s147_s6 = sshll.u32 %s259_s30, 4 }
  0x24   :  { %s135_s9 = scalar_lea.hbm %s254_s1, %s147_s6 }
  0x25   :  { %s136_s10 = scalar_lea.hbm %s135_s9, 128 }
  0x26   :  { %51 = dma.general %s136_s10, 16, %s37_s5, %s192_s11, %s193_s12, [#allocation8], %s191_s27, 0  }
  0x27   :  { %s148_s13 = sld [smem:[#allocation4 + $0x2]] }
  0x2d   :  { %s149_s14 = sadd.s32 4294967295, %s148_s13 }
  0x2e   :  { %p54_p5 = scmp.gt.s32.totalorder %s149_s14, 0 }
  0x30   :  { %s261_s14 = smov (!%p54_p5, %s149_s14), 0 }
  0x31   :  { %s150_s18 = sshll.u32 %s261_s14, 4 }
  0x32   :  { %s138_s21 = scalar_lea.hbm %s254_s1, %s150_s18 }
  0x33   :  { %s139_s22 = scalar_lea.hbm %s138_s21, 256 }
  0x34   :  { %73 = dma.general %s139_s22, 16, %s59_s17, %s194_s23, %s195_s24, [#allocation10], %s191_s27, 0  }
  0x35   :  { %s151_s25 = sld [smem:[#allocation4 + $0x3]] }
  0x3b   :  { %s152_s26 = sadd.s32 4294967295, %s151_s25 }
  0x3c   :  { %p76_p6 = scmp.gt.s32.totalorder %s152_s26, 0 }
  0x3e   :  { %s263_s26 = smov (!%p76_p6, %s152_s26), 0 }
  0x3f   :  { %s153_s30 = sshll.u32 %s263_s26, 4 }
  0x40   :  { %s141_s5 = scalar_lea.hbm %s254_s1, %s153_s30 }
  0x41   :  { %s142_s6 = scalar_lea.hbm %s141_s5, 384 }
  0x42   :  { %95 = dma.general %s142_s6, 16, %s81_s0, %s196_s7, %s197_s8, [#allocation12], %s191_s27, 0  }
  0x43   :  { %180 = dma.done.wait [#allocation2], 16 }
  0x44   :  { %181 = vsyncadd [#allocation2], 4294967280 }
  0x45   :  { %182 = dma.done.wait [#allocation2 + $0x1], 16 }
  0x46   :  { %183 = vsyncadd [#allocation2 + $0x1], 4294967280 }
  0x47   :  { %184 = dma.done.wait [#allocation2 + $0x2], 16 }
  0x48   :  { %185 = vsyncadd [#allocation2 + $0x2], 4294967280 }
  0x49   :  { %186 = dma.done.wait [#allocation2 + $0x3], 16 }
  0x4a   :  { %187 = vsyncadd [#allocation2 + $0x3], 4294967280 }
  0x4b   :  { %105 = vsyncmov [#allocation2] }
  0x4e   :  { %s106_s2 = vpop.sfrf %105 }
  0x4f   :  { %p154_p7 = scmp.ne.s32.totalorder %s106_s2, 0 }
  0x51   :  { %110 = shalt.err (%p154_p7)  }
  0x52   :  { %112 = vsyncmov [#allocation2 + $0x1] }
  0x55   :  { %s113_s9 = vpop.sfrf %112 }
  0x56   :  { %p155_p8 = scmp.ne.s32.totalorder %s113_s9, 0 }
  0x58   :  { %117 = shalt.err (%p155_p8)  }
  0x59   :  { %119 = vsyncmov [#allocation2 + $0x2] }
  0x5c   :  { %s120_s1 = vpop.sfrf %119 }
  0x5d   :  { %p156_p9 = scmp.ne.s32.totalorder %s120_s1, 0 }
  0x5f   :  { %124 = shalt.err (%p156_p9)  }
  0x60   :  { %126 = vsyncmov [#allocation2 + $0x3] }
  0x63   :  { %s127_s27 = vpop.sfrf %126 }
  0x64   :  { %p157_p10 = scmp.ne.s32.totalorder %s127_s27, 0 }
  0x66   :  { %131 = shalt.err (%p157_p10)  }

</bundles_post_ra>
